<compile_context>
chip_gen: v7x
topology: tpu7x:2x2x1
jax: 0.10.0
libtpu: 0.0.40
codegen_flags: <defaults>
</compile_context>

<pallas_src>
import functools

import jax
import jax.numpy as jnp
import numpy as np
from jax.experimental import pallas as pl
from jax.experimental.pallas import tpu as pltpu


# ----------------------------------------------------------------------------
# Helpers
# ----------------------------------------------------------------------------
def _pick_hw_tile(hw, cap=2048):
    """Largest lane-tile <= cap that divides hw (multiple of 128), else hw."""
    if hw <= cap:
        return hw
    t = (cap // 128) * 128
    while t >= 128:
        if hw % t == 0:
            return t
        t -= 128
    return hw  # fallback: one slab (hw not a multiple of 128)


# ----------------------------------------------------------------------------
# Pallas kernels (channel-major: blocks are (1, C, T) with H*W on lanes)
# ----------------------------------------------------------------------------
def _inner_kernel(x_ref, lr_ref, wT_ref, bias_ref, o_ref):
    # x_ref, lr_ref, o_ref : (1, C, T);  wT_ref : (C, 2C);  bias_ref : (1, C, 1)
    xl = jnp.concatenate([x_ref[0], lr_ref[0]], axis=0)                # (2C, T)
    y = jnp.dot(wT_ref[...], xl, preferred_element_type=jnp.float32)  # (C, T)
    o_ref[0] = jnp.tanh(y + bias_ref[0]).astype(o_ref.dtype)


def _cfg_fused_kernel(x_ref, lr_ref, wT_ref, bu_ref, bc_ref, o_ref, *,
                      cond_scale):
    # Shared linear part is computed once; only the conditioning bias differs
    # between the uncond and cond branches.  Combine in-register, store once.
    xl = jnp.concatenate([x_ref[0], lr_ref[0]], axis=0)                # (2C, T)
    y = jnp.dot(wT_ref[...], xl, preferred_element_type=jnp.float32)  # (C, T)
    uncond = jnp.tanh(y + bu_ref[0])
    cond = jnp.tanh(y + bc_ref[0])
    o_ref[0] = (uncond + (cond - uncond) * cond_scale).astype(o_ref.dtype)


# ----------------------------------------------------------------------------
# Synthetic inner model (exposes plain call + fused CFG call)
# ----------------------------------------------------------------------------
class SyntheticInnerModel:
    def __init__(self, params, hw_tile_cap=2048):
        w, wc, b_sig, b_lrs = params
        self.wT = jnp.asarray(w, jnp.float32).T                    # (C, 2C)
        self.wc = jnp.asarray(wc, jnp.float32)                     # (D, C)
        self.b_sig = jnp.asarray(b_sig, jnp.float32).reshape(-1)   # (C,)
        self.b_lrs = jnp.asarray(b_lrs, jnp.float32).reshape(-1)   # (C,)
        self.hw_tile_cap = hw_tile_cap

    # (N, C) conditioning bias, hoisted out of the kernel
    def _bias(self, sigma, low_res_sigma, c_vec):
        return (sigma.astype(jnp.float32)[:, None] * self.b_sig[None, :]
                + low_res_sigma.astype(jnp.float32)[:, None] * self.b_lrs[None, :]
                + c_vec.astype(jnp.float32) @ self.wc)

    @staticmethod
    def _flatten(x):
        n, ch, h, wd = x.shape
        return x.reshape(n, ch, h * wd).astype(jnp.float32), (n, ch, h, wd)

    def _specs(self, n, ch, hw, t):
        in_specs = [
            pl.BlockSpec((1, ch, t), lambda b, i: (b, 0, i)),       # x
            pl.BlockSpec((1, ch, t), lambda b, i: (b, 0, i)),       # low_res
            pl.BlockSpec((ch, 2 * ch), lambda b, i: (0, 0)),        # wT
        ]
        out_spec = pl.BlockSpec((1, ch, t), lambda b, i: (b, 0, i))
        bias_spec = pl.BlockSpec((1, ch, 1), lambda b, i: (b, 0, 0))
        return in_specs, bias_spec, out_spec

    def __call__(self, x, sigma, *, low_res, low_res_sigma, c):
        x_f, (n, ch, h, wd) = self._flatten(x)
        lr_f, _ = self._flatten(low_res)
        hw = h * wd
        t = _pick_hw_tile(hw, self.hw_tile_cap)
        bias = self._bias(sigma, low_res_sigma, c[0]).reshape(n, ch, 1)

        in_specs, bias_spec, out_spec = self._specs(n, ch, hw, t)
        out = pl.pallas_call(
            _inner_kernel,
            out_shape=jax.ShapeDtypeStruct((n, ch, hw), jnp.float32),
            grid_spec=pltpu.PrefetchScalarGridSpec(
                num_scalar_prefetch=0,
                grid=(n, hw // t),
                in_specs=in_specs + [bias_spec],
                out_specs=out_spec,
            ),
            compiler_params=pltpu.CompilerParams(
                dimension_semantics=("parallel", "parallel"),
                vmem_limit_bytes=32 * 1024 * 1024),
        )(x_f, lr_f, self.wT, bias)
        return out.reshape(n, ch, h, wd)

    def cfg_call(self, x, sigma, *, low_res, low_res_sigma, uc, c, cond_scale):
        x_f, (n, ch, h, wd) = self._flatten(x)
        lr_f, _ = self._flatten(low_res)
        hw = h * wd
        t = _pick_hw_tile(hw, self.hw_tile_cap)
        bias_u = self._bias(sigma, low_res_sigma, uc[0]).reshape(n, ch, 1)
        bias_c = self._bias(sigma, low_res_sigma, c[0]).reshape(n, ch, 1)

        in_specs, bias_spec, out_spec = self._specs(n, ch, hw, t)
        out = pl.pallas_call(
            functools.partial(_cfg_fused_kernel, cond_scale=float(cond_scale)),
            out_shape=jax.ShapeDtypeStruct((n, ch, hw), jnp.float32),
            grid_spec=pltpu.PrefetchScalarGridSpec(
                num_scalar_prefetch=0,
                grid=(n, hw // t),
                in_specs=in_specs + [bias_spec, bias_spec],
                out_specs=out_spec,
            ),
            compiler_params=pltpu.CompilerParams(
                dimension_semantics=("parallel", "parallel"),
                vmem_limit_bytes=32 * 1024 * 1024),
        )(x_f, lr_f, self.wT, bias_u, bias_c)
        return out.reshape(n, ch, h, wd)


def make_inner_model(params):
    return SyntheticInnerModel(params)


# ----------------------------------------------------------------------------
# CFGUpscaler (mirrors the PyTorch forward semantics)
# ----------------------------------------------------------------------------
class CFGUpscaler:
    def __init__(self, model, uc, cond_scale):
        self.inner_model = model
        self.uc = uc
        self.cond_scale = cond_scale

    def __call__(self, x, sigma, low_res, low_res_sigma, c):
        if self.cond_scale in (0.0, 1.0):
            c_in = self.uc if self.cond_scale == 0.0 else c
            return self.inner_model(x, sigma, low_res=low_res,
                                    low_res_sigma=low_res_sigma, c=c_in)
        # Fused CFG: mathematically identical to cat([x]*2) -> chunk(2) ->
        # uncond + (cond - uncond) * cond_scale, but x/low_res are read once
        # and the combine happens in-register inside the same kernel.
        return self.inner_model.cfg_call(
            x, sigma, low_res=low_res, low_res_sigma=low_res_sigma,
            uc=self.uc, c=c, cond_scale=float(self.cond_scale))


# ----------------------------------------------------------------------------
# Pure-JAX reference (for correctness check)
# ----------------------------------------------------------------------------
def _inner_model_ref(x, sigma, low_res, low_res_sigma, c, params):
    w, wc, b_sig, b_lrs = params
    n, ch, h, wd = x.shape
    xf = jnp.transpose(x, (0, 2, 3, 1)).reshape(n, h * wd, ch)
    lrf = jnp.transpose(low_res, (0, 2, 3, 1)).reshape(n, h * wd, ch)
    y = xf @ w[:ch] + lrf @ w[ch:]
    y = (y
         + sigma[:, None, None] * b_sig[None]
         + low_res_sigma[:, None, None] * b_lrs[None]
         + (c[0] @ wc)[:, None, :])
    y = jnp.tanh(y)
    return jnp.transpose(y.reshape(n, h, wd, ch), (0, 3, 1, 2))


def _cfg_ref(x, sigma, low_res, low_res_sigma, uc, c, cond_scale, params):
    # The original PyTorch duplicated-batch formulation.
    x_in = jnp.concatenate([x] * 2)
    sigma_in = jnp.concatenate([sigma] * 2)
    lr_in = jnp.concatenate([low_res] * 2)
    lrs_in = jnp.concatenate([low_res_sigma] * 2)
    c_in = [jnp.concatenate([u, cc]) for u, cc in zip(uc, c)]
    out = _inner_model_ref(x_in, sigma_in, lr_in, lrs_in, c_in, params)
    uncond, cond = jnp.split(out, 2, axis=0)
    return uncond + (cond - uncond) * cond_scale


# ----------------------------------------------------------------------------
if __name__ == "__main__":
    N, C, H, W, D = 2, 8, 16, 16, 32
    cond_scale = 7.5

    key = jax.random.PRNGKey(0)
    ks = jax.random.split(key, 10)
    # deterministic "weights" for the synthetic inner model
    w = 0.1 * jax.random.normal(ks[0], (2 * C, C), dtype=jnp.float32)
    wc = 0.1 * jax.random.normal(ks[1], (D, C), dtype=jnp.float32)
    b_sig = 0.1 * jax.random.normal(ks[2], (1, C), dtype=jnp.float32)
    b_lrs = 0.1 * jax.random.normal(ks[3], (1, C), dtype=jnp.float32)
    params = (w, wc, b_sig, b_lrs)

    # inputs (PyTorch NCHW convention)
    x = jax.random.normal(ks[4], (N, C, H, W), dtype=jnp.float32)
    low_res = jax.random.normal(ks[5], (N, C, H, W), dtype=jnp.float32)
    sigma = jax.random.uniform(ks[6], (N,), dtype=jnp.float32) + 0.5
    low_res_sigma = jax.random.uniform(ks[7], (N,), dtype=jnp.float32) + 0.5
    uc = [jax.random.normal(ks[8], (N, D), dtype=jnp.float32)]
    c = [jax.random.normal(ks[9], (N, D), dtype=jnp.float32)]

    inner_model = make_inner_model(params)

    # fused CFG path (cond_scale not in {0, 1})
    model = CFGUpscaler(inner_model, uc, cond_scale)
    out = jax.block_until_ready(model(x, sigma, low_res, low_res_sigma, c))
    ref = _cfg_ref(x, sigma, low_res, low_res_sigma, uc, c, cond_scale, params)
    np.testing.assert_allclose(np.asarray(out), np.asarray(ref),
                               rtol=1e-4, atol=1e-4)

    # trivial-scale branch (cond_scale == 1.0 -> plain inner-model call)
    model_plain = CFGUpscaler(inner_model, uc, 1.0)
    out_plain = jax.block_until_ready(
        model_plain(x, sigma, low_res, low_res_sigma, c))
    ref_plain = _inner_model_ref(x, sigma, low_res, low_res_sigma, c, params)
    np.testing.assert_allclose(np.asarray(out_plain), np.asarray(ref_plain),
                               rtol=1e-4, atol=1e-4)

    # trivial-scale branch (cond_scale == 0.0 -> plain call with uc)
    model_uc = CFGUpscaler(inner_model, uc, 0.0)
    out_uc = jax.block_until_ready(
        model_uc(x, sigma, low_res, low_res_sigma, c))
    ref_uc = _inner_model_ref(x, sigma, low_res, low_res_sigma, uc, params)
    np.testing.assert_allclose(np.asarray(out_uc), np.asarray(ref_uc),
                               rtol=1e-4, atol=1e-4)

    print("KERNEL_OK")
</pallas_src>

<mosaic_0001>
module attributes {stable_mosaic.version = 11 : i64} {
  func.func @_cfg_fused_kernel(%arg0: i32, %arg1: i32, %arg2: memref<1x8x256xf32, #tpu.memory_space<vmem>>, %arg3: memref<1x8x256xf32, #tpu.memory_space<vmem>>, %arg4: memref<8x16xf32, #tpu.memory_space<vmem>>, %arg5: memref<1x8x1xf32, #tpu.memory_space<vmem>>, %arg6: memref<1x8x1xf32, #tpu.memory_space<vmem>>, %arg7: memref<1x8x256xf32, #tpu.memory_space<vmem>>) attributes {dimension_semantics = [#tpu.dimension_semantics<parallel>, #tpu.dimension_semantics<parallel>], iteration_bounds = array<i64: 2, 1>, scalar_prefetch = 0 : i64, scratch_operands = 0 : i64, tpu.core_type = #tpu.core_type<tc>, window_params = [{transform_indices = @transform_0, window_bounds = array<i64: 1, 8, 256>}, {transform_indices = @transform_1, window_bounds = array<i64: 1, 8, 256>}, {pipeline_mode = #tpu.pipeline_mode<synchronous>, transform_indices = @transform_2, window_bounds = array<i64: 8, 16>}, {transform_indices = @transform_3, window_bounds = array<i64: 1, 8, 1>}, {transform_indices = @transform_4, window_bounds = array<i64: 1, 8, 1>}, {transform_indices = @transform_5, window_bounds = array<i64: 1, 8, 256>}]} {
    %c0 = arith.constant 0 : index
    %c0_0 = arith.constant 0 : index
    %c0_1 = arith.constant 0 : index
    %0 = vector.load %arg2[%c0, %c0_0, %c0_1] : memref<1x8x256xf32, #tpu.memory_space<vmem>>, vector<1x8x256xf32>
    %1 = vector.shape_cast %0 : vector<1x8x256xf32> to vector<8x256xf32>
    %c0_2 = arith.constant 0 : index
    %c0_3 = arith.constant 0 : index
    %c0_4 = arith.constant 0 : index
    %2 = vector.load %arg3[%c0_2, %c0_3, %c0_4] : memref<1x8x256xf32, #tpu.memory_space<vmem>>, vector<1x8x256xf32>
    %3 = vector.shape_cast %2 : vector<1x8x256xf32> to vector<8x256xf32>
    %4 = tpu.concatenate %1, %3 in 0 : vector<8x256xf32>, vector<8x256xf32> -> vector<16x256xf32>
    %c0_5 = arith.constant 0 : index
    %c0_6 = arith.constant 0 : index
    %5 = vector.load %arg4[%c0_5, %c0_6] : memref<8x16xf32, #tpu.memory_space<vmem>>, vector<8x16xf32>
    %cst = arith.constant dense<0.000000e+00> : vector<8x256xf32>
    %6 = tpu.matmul %5, %4, %cst {dimension_numbers = #tpu.dot_dimension_numbers<[1], [0], [0], [1], [0, 0, 1, 1], [], []>} : vector<8x16xf32>, vector<16x256xf32>, vector<8x256xf32> -> vector<8x256xf32>
    %c0_7 = arith.constant 0 : index
    %c0_8 = arith.constant 0 : index
    %c0_9 = arith.constant 0 : index
    %7 = vector.load %arg5[%c0_7, %c0_8, %c0_9] : memref<1x8x1xf32, #tpu.memory_space<vmem>>, vector<1x8x1xf32>
    %8 = vector.shape_cast %7 : vector<1x8x1xf32> to vector<8x1xf32>
    %9 = vector.broadcast %8 : vector<8x1xf32> to vector<8x256xf32>
    %10 = arith.addf %6, %9 : vector<8x256xf32>
    %11 = math.tanh %10 : vector<8x256xf32>
    %c0_10 = arith.constant 0 : index
    %c0_11 = arith.constant 0 : index
    %c0_12 = arith.constant 0 : index
    %12 = vector.load %arg6[%c0_10, %c0_11, %c0_12] : memref<1x8x1xf32, #tpu.memory_space<vmem>>, vector<1x8x1xf32>
    %13 = vector.shape_cast %12 : vector<1x8x1xf32> to vector<8x1xf32>
    %14 = vector.broadcast %13 : vector<8x1xf32> to vector<8x256xf32>
    %15 = arith.addf %6, %14 : vector<8x256xf32>
    %16 = math.tanh %15 : vector<8x256xf32>
    %17 = arith.subf %16, %11 : vector<8x256xf32>
    %cst_13 = arith.constant 7.500000e+00 : f32
    %18 = vector.broadcast %cst_13 : f32 to vector<8x256xf32>
    %19 = arith.mulf %17, %18 : vector<8x256xf32>
    %20 = arith.addf %11, %19 : vector<8x256xf32>
    %c0_14 = arith.constant 0 : index
    %c0_15 = arith.constant 0 : index
    %c0_16 = arith.constant 0 : index
    %21 = vector.load %arg7[%c0_14, %c0_15, %c0_16] : memref<1x8x256xf32, #tpu.memory_space<vmem>>, vector<1x8x256xf32>
    %22 = vector.shape_cast %21 : vector<1x8x256xf32> to vector<8x256xf32>
    %23 = vector.shape_cast %20 : vector<8x256xf32> to vector<1x8x256xf32>
    tpu.vector_store %arg7[%c0_14, %c0_15, %c0_16], %23 {strides = array<i32>} : memref<1x8x256xf32, #tpu.memory_space<vmem>>, vector<1x8x256xf32>,
    return
  }
  func.func @transform_0(%arg0: i32, %arg1: i32) -> (i32, i32, i32) {
    %c0_i32 = arith.constant 0 : i32
    %c0_i32_0 = arith.constant 0 : i32
    return %arg0, %c0_i32, %arg1 : i32, i32, i32
  }
  func.func @transform_1(%arg0: i32, %arg1: i32) -> (i32, i32, i32) {
    %c0_i32 = arith.constant 0 : i32
    %c0_i32_0 = arith.constant 0 : i32
    return %arg0, %c0_i32, %arg1 : i32, i32, i32
  }
  func.func @transform_2(%arg0: i32, %arg1: i32) -> (i32, i32) {
    %c0_i32 = arith.constant 0 : i32
    %c0_i32_0 = arith.constant 0 : i32
    %c0_i32_1 = arith.constant 0 : i32
    return %c0_i32, %c0_i32_0 : i32, i32
  }
  func.func @transform_3(%arg0: i32, %arg1: i32) -> (i32, i32, i32) {
    %c0_i32 = arith.constant 0 : i32
    %c0_i32_0 = arith.constant 0 : i32
    %c0_i32_1 = arith.constant 0 : i32
    return %arg0, %c0_i32, %c0_i32_0 : i32, i32, i32
  }
  func.func @transform_4(%arg0: i32, %arg1: i32) -> (i32, i32, i32) {
    %c0_i32 = arith.constant 0 : i32
    %c0_i32_0 = arith.constant 0 : i32
    %c0_i32_1 = arith.constant 0 : i32
    return %arg0, %c0_i32, %c0_i32_0 : i32, i32, i32
  }
  func.func @transform_5(%arg0: i32, %arg1: i32) -> (i32, i32, i32) {
    %c0_i32 = arith.constant 0 : i32
    %c0_i32_0 = arith.constant 0 : i32
    return %arg0, %c0_i32, %arg1 : i32, i32, i32
  }
}

</mosaic_0001>

<bundles_post_ra>
// kernel: tpu_custom_call.1
= control target key start
LH: loop header
LB: loop body
LE: loop exit
PB: predicated region body
PF: predicated region fallthrough
CT: control target
= control target key end

     0   :  { %10 = vsyncpa [#allocation3], 0  ;;  %s1020_s0 = inlined_call_operand.vmem [shape: f32[2,8,256], index: 0, kind: input, shape index: {}]   ;;  %s1021_s1 = inlined_call_operand.hbm [shape: f32[2,8,256], index: 1, kind: input, shape index: {}]   ;;  %s1022_s2 = inlined_call_operand.vmem [shape: f32[8,16], index: 2, kind: input, shape index: {}]   ;;  %s1023_s3 = inlined_call_operand.vmem [shape: f32[2,8,1], index: 3, kind: input, shape index: {}]   ;;  %s1024_s4 = inlined_call_operand.vmem [shape: f32[2,8,1], index: 4, kind: input, shape index: {}]   ;;  %s1025_s5 = inlined_call_operand.hbm [shape: f32[2,8,256], index: 5, kind: output, shape index: {}]  }
   0x1   :  { %12 = vsyncpa [#allocation3 + $0x1], 0 }
   0x2   :  { %13 = vsyncpa [#allocation4], 0 }
   0x3   :  { %15 = vsyncpa [#allocation4 + $0x1], 0  ;;  %s830_s18 = smov 0   ;;  %s832_s19 = smov 0  }
   0x4   :  { %s834_s20 = smov 0   ;;  %s836_s21 = smov 0  }
   0x5   :  { %s838_s22 = smov 0   ;;  %s840_s23 = smov 0  }
   0x6 LB: > { %s582_s24 = sadd.s32 4294967295, %s794_s23   ;;  %s583_s25 = sadd.s32 4294967294, %s794_s23   ;;  %s794_s23 = sphi %s840_s23, %s21_s23   ;;  %s790_s22 = sphi %s838_s22, %s1041_s22   ;;  %s786_s21 = sphi %s836_s21, %s1040_s21   ;;  %s782_s20 = sphi %s834_s20, %s1039_s20   ;;  %s778_s19 = sphi %s832_s19, %s1038_s19   ;;  %s774_s18 = sphi %s830_s18, %s1037_s18  }
   0x7   : > { %s33_s26 = sadd.s32 1, %s790_s22  ;;  %s70_s27 = sadd.s32 1, %s782_s20 }
   0x8   : > { %p35_p0 = scmp.ge.s32.totalorder %s33_s26, 2  ;;  %p77_p1 = scmp.ne.s32.totalorder %s782_s20, %s778_s19 }
   0x9   : > { %p78_p2 = scmp.eq.s32.totalorder %s794_s23, 0  ;;  %p83_p3 = scmp.ne.s32.totalorder %s778_s19, %s774_s18 }
   0xa   : > { %s1043_s26 = smov (%p35_p0, %s33_s26), 0  ;;  %p84_p5 = scmp.eq.s32.totalorder %s582_s24, 0 }
   0xb   : > { %p871_p4 = por %p78_p2, %p77_p1  ;;  %s65_s29 = ssub.s32 %s790_s22, %s1043_s26 }
   0xc   : > { %p182_p6 = scmp.eq.s32.totalorder %s582_s24, 1  ;;  %p68_p7 = scmp.eq.s32.totalorder %s65_s29, 0 }
   0xd   : > { %p877_p8 = por %p84_p5, %p83_p3  ;;  %p188_p10 = scmp.eq.s32.totalorder %s583_s25, 1 }
   0xe   : > { %p881_p9 = por %p182_p6, %p77_p1  ;;  %p621_p13 = scmp.lt.s32.totalorder %s794_s23, 2 }
   0xf   : > { %s886_s7 = scalar_select %p68_p7, %s782_s20, %s70_s27  }
  0x10   : > { %s1029_s6 = scalar_select %p881_p9, 1, 0 }
  0x11   : > { %p888_p11 = por %p188_p10, %p83_p3  ;;  %s224_s9 = sand.u32 1, %s782_s20  }
  0x12   : > { %s586_s10 = sshll.u32 %s224_s9, 4  ;;  %s602_s11 = sshll.u32 %s790_s22, 8 }
  0x13   : > { %s1030_s8 = scalar_select %p888_p11, 1, 0 }
  0x14   : > { %s899_s14 = scalar_lea.hbm %s1021_s1, %s602_s11  ;;  %s228_s15 = scalar_lea.vmem [#allocation2], %s586_s10 }
  0x15   : > { %s238_s16 = sshll.u32 %s228_s15, 4  ;;  %p905_p0 = pnand %p621_p13, %p871_p4  ;;  %s901_s16 = int_to_ptr.vmem [resolvable:$true] %s238_s16 }
  0x16   : > { %s225_s24 = scalar_lea.sflag [#allocation3], %s224_s9  ;;  %s682_s25 = scalar_lea.hbm %s899_s14, 256 }
  0x17   : > { %p683_p3 = scmp.ne.s32.totalorder %s899_s14, %s682_s25  ;;  %p684_p5 = pneg %p905_p0 }
  0x18   : > { %s687_s28 = scalar_lea.hbm %s1021_s1, 512  ;;  %p688_p4 = scmp.lt.u32.totalorder %s899_s14, %s1021_s1 }
  0x19   : > { %p685_p6 = pnand %p684_p5, %p683_p3  ;;  %p689_p10 = scmp.lt.u32.totalorder %s687_s28, %s682_s25 }
  0x1a   : > { %p691_p12 = scmp.lt.u32.totalorder %s682_s25, %s899_s14 }
  0x1b   : > { %p686_p7 = pneg %p685_p6  ;;  %p690_p13 = por %p689_p10, %p688_p4 }
  0x1d   : > { %p692_p1 = por %p691_p12, %p690_p13 }
  0x1f   : > { %p693_p2 = pnand %p692_p1, %p686_p7 }
  0x21   : > { %696 = shalt.err (!%p693_p2)
}
  0x22   : > { %s697_s9 = scalar_lea.vmem %s901_s16, 256  ;;  %s796_s12 = smov [#allocation2]  }
  0x23   : > { %p698_p3 = scmp.ne.s32.totalorder %s901_s16, %s697_s9  ;;  %s702_s13 = sshll.u32 %s796_s12, 4  ;;  %s703_s13 = int_to_ptr.vmem [resolvable:$false] %s702_s13 }
  0x24   : > { %s704_s15 = scalar_lea.vmem %s703_s13, 512  ;;  %p705_p9 = scmp.lt.s32.totalorder %s901_s16, %s703_s13 }
  0x25   : > { %p700_p6 = pnand %p698_p3, %p684_p5  ;;  %p706_p4 = scmp.lt.s32.totalorder %s704_s15, %s697_s9 }
  0x27   : > { %p701_p11 = pneg %p700_p6  ;;  %p707_p10 = por %p706_p4, %p705_p9 }
  0x29   : > { %p708_p12 = pnand %p707_p10, %p701_p11 }
  0x2b   : > { %711 = shalt.err (!%p708_p12)
}
  0x2c   : > { %616 = dma.hbm_to_vmem [thread:$0]  (!%p905_p0), %s899_s14, 256, %s901_s16, %s225_s24  }
  0x2d   : > { %p1032_p1 = scmp.lt.s32.totalorder %s794_s23, 3  ;;  %p1033_p2 = scmp.ge.s32.totalorder %s794_s23, 1 }
  0x2f   : > { %p258_p5 = pnand %p1033_p2, %p1032_p1 }
  0x30   : > { %s941_s25 = sand.u32 (!%p258_p5), 1, %s778_s19  }
  0x31   : > { %261 = sbr.rel (%p258_p5) target bundleno = 318 (0x13e), region = 40  ;;  %s590_s27 = sshll.u32 (!%p258_p5), %s941_s25, 4 }
  0x32   : > { %s264_s29 = scalar_lea.sflag (!%p258_p5), [#allocation3], %s941_s25  ;;  %s267_s17 = scalar_lea.vmem (!%p258_p5), [#allocation2], %s590_s27 }
  0x38   : > { %765 = dma.done.wait (%p877_p8), %s264_s29, 256  }
  0x39   : > { %767 = vsyncadd (%p877_p8), %s264_s29, 4294967040  ;;  %p312_p9 = scmp.lt.s32.totalorder %s786_s21, 1  ;;  %v797_v0 = vmov 0.0   ;;  %v798_v1 = vmov 0   ;;  %v334_v3 = vld [vmem:[%s267_s17 + $0x8] sm:$0xff]  ;;  %v333_v6 = vld [vmem:[%s267_s17] sm:$0xff] }
  0x3a   : > { %404 = vmatprep.mubr.f32.mxu0 %v797_v0  ;;  %673 = vset.pattern.permute.xlu0 %v798_v1  ;;  %v335_v10 = vld [vmem:[%s1022_s2] sm:$0xff]  ;;  %vm336_vm0 = vcmask 130048   ;;  %s604_s17 = sshll.u32 %s786_s21, 8  ;;  %s440_s12 = scalar_lea.sflag [#allocation4], %s941_s25 }
  0x3b   : > { %s313_s14 = scalar_select %p312_p9, %s786_s21, 1 }
  0x3c   : > { %s971_s9 = scalar_lea.hbm %s1025_s5, %s604_s17  ;;  %p1034_p11 = scmp.ne.s32.totalorder %s1029_s6, 0 }
  0x3d   : > { %s603_s16 = sshll.u32 %s313_s14, 4  ;;  %s594_s24 = sshll.u32 %s313_s14, 3 }
  0x3e   : > { %s319_s11 = scalar_lea.vmem %s1020_s0, %s603_s16  ;;  %s325_s13 = scalar_lea.vmem %s1023_s3, %s594_s24 }
  0x3f   : > { %v332_v2 = vld [vmem:[%s319_s11 + $0x8] sm:$0xff]  ;;  %v331_v4 = vld [vmem:[%s319_s11] sm:$0xff]  ;;  %s329_s29 = scalar_lea.vmem %s1024_s4, %s594_s24  ;;  %s310_s24 = scalar_lea.vmem [#allocation5], %s590_s27 }
  0x40   : > { %v605_v5 = vpack.c.bf16 %v334_v3, %v332_v2  ;;  %v411_v7 = vld [vmem:[%s325_s13] sm:$0xff]  ;;  %v607_v8 = vpack.c.bf16 %v333_v6, %v331_v4  ;;  %s456_s28 = sshll.u32 %s310_s24, 4  ;;  %s799_s27 = smov [#allocation5]   ;;  %s973_s28 = int_to_ptr.vmem [resolvable:$true] %s456_s28 }
  0x41   : > { %414 = vperm.xlu0 %673, %v411_v7   ;;  %v421_v9 = vld [vmem:[%s329_s29] sm:$0xff]  ;;  %s712_s21 = scalar_lea.vmem %s973_s28, 256  ;;  %s716_s13 = sshll.u32 %s799_s27, 4  ;;  %s717_s13 = int_to_ptr.vmem [resolvable:$false] %s716_s13 }
  0x42   : > { %606 = vmatprep.subr.bf16.mxu0 %v605_v5  ;;  %p713_p8 = scmp.ne.s32.totalorder %s973_s28, %s712_s21  ;;  %s718_s30 = scalar_lea.vmem %s717_s13, 512 }
  0x43   : > { %608 = vmatpush1.bf16.msra.mxu0 %v607_v8  ;;  %p719_p13 = scmp.lt.s32.totalorder %s973_s28, %s717_s13  ;;  %p720_p3 = scmp.lt.s32.totalorder %s718_s30, %s712_s21 }
  0x44   : > { %p714_p0 = pnand %p713_p8, %p1034_p11 }
  0x45   : > { %424 = vperm.xlu0 %673, %v421_v9   ;;  %p721_p6 = por %p720_p3, %p719_p13 }
  0x46   : > { %596 = vmatmul.mubr.msk.f32.vlgmr.msra.gmra.mrb[0].mxu0 %vm336_vm0, %v335_v10  ;;  %p715_p7 = pneg %p714_p0 }
  0x48   : > { %p722_p4 = pnand %p721_p6, %p715_p7 }
  0xc0   : > { %v415_v11 = vpop.permute.xlu0 %414 }
  0xc4   : > { %v425_v12 = vpop.permute.xlu0 %424 }
 0x119   : > { %v406_v13 = vpop.f32.mrb[0].mxu0 }
 0x11a   : > { %v417_v14 = vadd.f32 %v415_v11, %v406_v13  ;;  %v427_v15 = vadd.f32 %v425_v12, %v406_v13  ;;  %v408_v16 = vpop.f32.mrb[1].mxu0 }
 0x11b   : > { %v418_v17 = vadd.f32 %v415_v11, %v408_v16  ;;  %v428_v18 = vadd.f32 %v425_v12, %v408_v16 }
 0x11c   : > { %674 = vtanh.f32 %v417_v14 }
 0x11d   : > { %676 = vtanh.f32 %v427_v15 }
 0x11e   : > { %678 = vtanh.f32 %v418_v17 }
 0x11f   : > { %680 = vtanh.f32 %v428_v18 }
 0x126   : > { %v675_v19 = vpop.eup %674 }
 0x127   : > { %v677_v20 = vpop.eup %676 }
 0x128   : > { %v679_v21 = vpop.eup %678  ;;  %v431_v22 = vsub.f32 %v677_v20, %v675_v19 }
 0x129   : > { %v681_v23 = vpop.eup %680 }
 0x12a   : > { %v433_v24 = vmul.f32 7.5, %v431_v22  ;;  %v432_v25 = vsub.f32 %v681_v23, %v679_v21 }
 0x12c   : > { %v434_v26 = vmul.f32 7.5, %v432_v25  ;;  %v435_v27 = vadd.f32 %v675_v19, %v433_v24 }
 0x12e   : > { %v436_v28 = vadd.f32 %v679_v21, %v434_v26  ;;  %437 = vst [vmem:[%s310_s24] sm:$0xff] %v435_v27 }
 0x130   : > { %438 = vst [vmem:[%s310_s24 + $0x8] sm:$0xff] %v436_v28 }
 0x131   : > { %725 = shalt.err (!%p722_p4)
}
 0x132   : > { %s726_s25 = scalar_lea.hbm %s971_s9, 256  ;;  %s730_s14 = scalar_lea.hbm %s1025_s5, 512 }
 0x133   : > { %p727_p10 = scmp.ne.s32.totalorder %s971_s9, %s726_s25  ;;  %p731_p2 = scmp.lt.u32.totalorder %s971_s9, %s1025_s5 }
 0x134   : > { %p732_p5 = scmp.lt.u32.totalorder %s730_s14, %s726_s25  ;;  %p734_p8 = scmp.lt.u32.totalorder %s726_s25, %s971_s9 }
 0x135   : > { %p728_p12 = pnand %p727_p10, %p1034_p11 }
 0x136   : > { %p733_p9 = por %p732_p5, %p731_p2 }
 0x137   : > { %p729_p1 = pneg %p728_p12 }
 0x138   : > { %p735_p0 = por %p734_p8, %p733_p9 }
 0x13a   : > { %p736_p7 = pnand %p735_p0, %p729_p1 }
 0x13c   : > { %739 = shalt.err (!%p736_p7)
}
 0x13d   : > { %611 = dma.vmem_to_hbm [thread:$0]  (%p1034_p11), %s973_s28, 256, %s971_s9, %s440_s12  }
 0x13e PF: > { %s468_s24 = sand.u32 1, %s774_s18   ;;  %p1035_p13 = scmp.ne.s32.totalorder %s1030_s8, 0 }
 0x13f   : > { %p1036_p3 = scmp.ge.s32.totalorder %s794_s23, 2  ;;  %s469_s10 = scalar_lea.sflag [#allocation4], %s468_s24 }
 0x141   : > { %p618_p6 = pnand %p1036_p3, %p1035_p13 }
 0x143   : > { %769 = dma.done.wait (!%p618_p6), %s469_s10, 256  }
 0x144   : > { %771 = vsyncadd (!%p618_p6), %s469_s10, 4294967040  ;;  %s21_s23 = sadd.s32 1, %s794_s23   ;;  %s1037_s18 = smov %s778_s19 }
 0x145   : > { %p18_p4 = scmp.ge.s32.totalorder %s21_s23, 4   ;;  %s1038_s19 = smov %s782_s20 }
 0x146   : > { %s1039_s20 = smov %s886_s7  ;;  %s1040_s21 = smov %s790_s22 }
 0x147   : > { %s1041_s22 = smov %s1043_s26  ;;  %20 = sbr.rel (!%p18_p4) target bundleno = 6 (0x6), region = 94 }
 0x14e   :  { %474 = vsyncpa [#allocation3], 1 }
 0x14f   :  { %476 = vsyncpa [#allocation3 + $0x1], 1 }
 0x150   :  { %477 = vsyncpa [#allocation4], 1 }
 0x151   :  { %479 = vsyncpa [#allocation4 + $0x1], 1 }

</bundles_post_ra>
